<compile_context>
chip_gen: v5e
topology: v5e:2x2
jax: 0.10.0
libtpu: 0.0.40
codegen_flags: <defaults>
</compile_context>

<pallas_src>
import functools

import jax
import jax.numpy as jnp
from jax.experimental import pallas as pl
from jax.experimental.pallas import tpu as pltpu


def _focal_loss_kernel(logits_ref, target_ref, out_ref, *, gamma):
    # (TN, C) tile; cast to f32 on the VPU (HBM input may be bf16/f16/f32).
    x = logits_ref[...].astype(jnp.float32)
    tgt = target_ref[...]                                    # (TN, 1) int32

    # Numerically stable log-sum-exp over the class (lane) axis.
    m = jnp.max(x, axis=-1, keepdims=True)                   # (TN, 1)
    shifted = x - m                                          # (TN, C)
    sumexp = jnp.sum(jnp.exp(shifted), axis=-1, keepdims=True)   # (TN, 1)

    # shifted[i, target[i]] via one-hot select + lane reduce (no dynamic
    # gather on the VPU).  log_probs is never materialised.
    # NOTE: an out-of-range target (e.g. ignore_index=-100) selects nothing,
    # so z_t = 0 -> loss uses only the logsumexp term (documented behaviour).
    col = jax.lax.broadcasted_iota(jnp.int32, x.shape, dimension=1)
    z_t = jnp.sum(jnp.where(col == tgt, shifted, 0.0), axis=-1, keepdims=True)

    logp = jnp.log(sumexp) - z_t        # = -log p_target (CE, reduction='none')
    p = jnp.exp(-logp)                  # = p_target
    q = jnp.maximum(1.0 - p, 0.0)       # clamp: p can round to 1 + eps

    g = float(gamma)
    if g == int(g) and 0 <= int(g) <= 16:
        mod = jnp.ones_like(q)
        for _ in range(int(g)):          # VPU multiplies; avoids EUP pow
            mod = mod * q
    else:
        mod = q ** g                     # general (non-integer) gamma path

    out_ref[...] = (mod * logp).astype(out_ref.dtype)


def _row_tile_cap(num_classes, budget_bytes=6 * 1024 * 1024):
    """Max row-tile from a VMEM budget.

    VMEM blocks are lane-padded to 128 and double-buffered:
      logits (TN, C->pad128) + targets (TN, 1->pad128) + out (TN, 1->pad128).
    6 MiB keeps us well under the smallest scoped-VMEM default (16 MiB, v5e)
    and leaves generous headroom on v7x (64 MiB physical).
    """
    lanes = ((num_classes + 127) // 128) * 128
    bytes_per_row = 2 * 4 * (lanes + 128 + 128)   # double-buffered f32/i32
    cap = budget_bytes // bytes_per_row
    return max(8, min(8192, (cap // 8) * 8))


def focal_loss(logits, targets, *, gamma=2, reduction="none", eps=1e-7):
    """Focal loss. logits: (N, C) float, targets: (N,) int.

    `eps` is unused (kept only for API parity with the PyTorch module, whose
    forward never reads self.eps).
    """
    del eps
    N, C = logits.shape

    # ---- tile / grid sizing (multiple of 8 rows; pad N up to tile) ----
    n8 = -(-N // 8) * 8
    tn = _row_tile_cap(C)
    num_tiles = -(-n8 // tn)
    if num_tiles == 1 and n8 >= 16:
        num_tiles = 2                    # v7x: give both TensorCores work
    tn = ((-(-n8 // num_tiles)) + 7) // 8 * 8
    n_pad = tn * num_tiles

    targets_i = targets.astype(jnp.int32)
    if n_pad != N:
        # Padded rows use class 0 (valid) and are sliced off afterwards.
        logits = jnp.pad(logits, ((0, n_pad - N), (0, 0)))
        targets_i = jnp.pad(targets_i, ((0, n_pad - N),))
    targets_2d = targets_i.reshape(n_pad, 1)

    out = pl.pallas_call(
        functools.partial(_focal_loss_kernel, gamma=gamma),
        out_shape=jax.ShapeDtypeStruct((n_pad, 1), jnp.float32),
        grid_spec=pltpu.PrefetchScalarGridSpec(
            num_scalar_prefetch=0,
            grid=(num_tiles,),
            in_specs=[
                pl.BlockSpec((tn, C), lambda i: (i, 0)),   # logits tile (orig dtype)
                pl.BlockSpec((tn, 1), lambda i: (i, 0)),   # target tile
            ],
            out_specs=pl.BlockSpec((tn, 1), lambda i: (i, 0)),
        ),
        compiler_params=pltpu.CompilerParams(
            dimension_semantics=("parallel",),
        ),
    )(logits, targets_2d)

    loss = out[:N, 0]                                       # (N,)
    if reduction == "mean":
        return loss.mean()
    elif reduction == "none":
        return loss
    else:
        raise NotImplementedError


def _focal_loss_ref(logits, targets, gamma=2.0):
    # Pure-JAX reference matching PyTorch semantics.
    log_probs = jax.nn.log_softmax(logits.astype(jnp.float32), axis=-1)
    logp = -jnp.take_along_axis(log_probs, targets[:, None], axis=-1)[:, 0]
    p = jnp.exp(-logp)
    return (1.0 - p) ** gamma * logp


if __name__ == "__main__":
    key = jax.random.PRNGKey(0)
    k1, k2, k3, k4 = jax.random.split(key, 4)

    # Primary check: N=128 samples, C=16 classes, reduction='none'.
    N, C = 128, 16
    logits = jax.random.normal(k1, (N, C), dtype=jnp.float32)
    targets = jax.random.randint(k2, (N,), 0, C, dtype=jnp.int32)

    loss = focal_loss(logits, targets, gamma=2, reduction="none")
    loss = jax.block_until_ready(loss)
    ref = _focal_loss_ref(logits, targets, gamma=2.0)
    assert loss.shape == (N,)
    assert jnp.allclose(loss, ref, atol=1e-5, rtol=1e-5), (
        f"max abs err {jnp.max(jnp.abs(loss - ref))}")

    # Ragged shape + 'mean' reduction (exercises the padding path).
    N2, C2 = 50, 7
    logits2 = jax.random.normal(k3, (N2, C2), dtype=jnp.float32)
    targets2 = jax.random.randint(k4, (N2,), 0, C2, dtype=jnp.int32)
    mean_loss = jax.block_until_ready(
        focal_loss(logits2, targets2, gamma=2, reduction="mean"))
    ref_mean = _focal_loss_ref(logits2, targets2, gamma=2.0).mean()
    assert jnp.allclose(mean_loss, ref_mean, atol=1e-5, rtol=1e-5), (
        f"mean err {abs(float(mean_loss) - float(ref_mean))}")

    print("KERNEL_OK")
</pallas_src>

<mosaic_0001>
module attributes {stable_mosaic.version = 11 : i64} {
  func.func @_focal_loss_kernel(%arg0: i32, %arg1: memref<64x16xf32, #tpu.memory_space<vmem>>, %arg2: memref<64x1xi32, #tpu.memory_space<vmem>>, %arg3: memref<64x1xf32, #tpu.memory_space<vmem>>) attributes {dimension_semantics = [#tpu.dimension_semantics<parallel>], iteration_bounds = array<i64: 2>, scalar_prefetch = 0 : i64, scratch_operands = 0 : i64, tpu.core_type = #tpu.core_type<tc>, window_params = [{transform_indices = @transform_0, window_bounds = array<i64: 64, 16>}, {transform_indices = @transform_1, window_bounds = array<i64: 64, 1>}, {transform_indices = @transform_2, window_bounds = array<i64: 64, 1>}]} {
    %c0 = arith.constant 0 : index
    %c0_0 = arith.constant 0 : index
    %0 = vector.load %arg1[%c0, %c0_0] : memref<64x16xf32, #tpu.memory_space<vmem>>, vector<64x16xf32>
    %c0_1 = arith.constant 0 : index
    %c0_2 = arith.constant 0 : index
    %1 = vector.load %arg2[%c0_1, %c0_2] : memref<64x1xi32, #tpu.memory_space<vmem>>, vector<64x1xi32>
    %cst = arith.constant dense<0xFF800000> : vector<64xf32>
    %2 = vector.multi_reduction <maximumf>, %0, %cst [1] : vector<64x16xf32> to vector<64xf32>
    %3 = vector.shape_cast %2 : vector<64xf32> to vector<64x1xf32>
    %4 = vector.broadcast %3 : vector<64x1xf32> to vector<64x16xf32>
    %5 = arith.subf %0, %4 : vector<64x16xf32>
    %6 = math.exp %5 : vector<64x16xf32>
    %cst_3 = arith.constant dense<0.000000e+00> : vector<64xf32>
    %7 = vector.multi_reduction <add>, %6, %cst_3 [1] : vector<64x16xf32> to vector<64xf32>
    %8 = vector.shape_cast %7 : vector<64xf32> to vector<64x1xf32>
    %9 = tpu.iota {dimensions = array<i32: 1>} : vector<64x16xi32>
    %10 = vector.broadcast %1 : vector<64x1xi32> to vector<64x16xi32>
    %11 = arith.cmpi eq, %9, %10 : vector<64x16xi32>
    %cst_4 = arith.constant 0.000000e+00 : f32
    %12 = vector.broadcast %cst_4 : f32 to vector<64x16xf32>
    %13 = arith.select %11, %5, %12 : vector<64x16xi1>, vector<64x16xf32>
    %cst_5 = arith.constant dense<0.000000e+00> : vector<64xf32>
    %14 = vector.multi_reduction <add>, %13, %cst_5 [1] : vector<64x16xf32> to vector<64xf32>
    %15 = vector.shape_cast %14 : vector<64xf32> to vector<64x1xf32>
    %16 = math.log %8 : vector<64x1xf32>
    %17 = arith.subf %16, %15 : vector<64x1xf32>
    %cst_6 = arith.constant 0.000000e+00 : f32
    %18 = vector.broadcast %cst_6 : f32 to vector<64x1xf32>
    %19 = arith.subf %18, %17 : vector<64x1xf32>
    %20 = math.exp %19 : vector<64x1xf32>
    %cst_7 = arith.constant 1.000000e+00 : f32
    %21 = vector.broadcast %cst_7 : f32 to vector<64x1xf32>
    %22 = arith.subf %21, %20 : vector<64x1xf32>
    %cst_8 = arith.constant 0.000000e+00 : f32
    %23 = vector.broadcast %cst_8 : f32 to vector<64x1xf32>
    %24 = arith.maximumf %22, %23 : vector<64x1xf32>
    %cst_9 = arith.constant 1.000000e+00 : f32
    %25 = vector.broadcast %cst_9 : f32 to vector<64x1xf32>
    %26 = arith.mulf %25, %24 : vector<64x1xf32>
    %27 = arith.mulf %26, %24 : vector<64x1xf32>
    %28 = arith.mulf %27, %17 : vector<64x1xf32>
    %c0_10 = arith.constant 0 : index
    %c0_11 = arith.constant 0 : index
    %29 = vector.load %arg3[%c0_10, %c0_11] : memref<64x1xf32, #tpu.memory_space<vmem>>, vector<64x1xf32>
    tpu.vector_store %arg3[%c0_10, %c0_11], %28 {strides = array<i32>} : memref<64x1xf32, #tpu.memory_space<vmem>>, vector<64x1xf32>,
    return
  }
  func.func @transform_0(%arg0: i32) -> (i32, i32) {
    %c0_i32 = arith.constant 0 : i32
    %c0_i32_0 = arith.constant 0 : i32
    return %arg0, %c0_i32 : i32, i32
  }
  func.func @transform_1(%arg0: i32) -> (i32, i32) {
    %c0_i32 = arith.constant 0 : i32
    %c0_i32_0 = arith.constant 0 : i32
    return %arg0, %c0_i32 : i32, i32
  }
  func.func @transform_2(%arg0: i32) -> (i32, i32) {
    %c0_i32 = arith.constant 0 : i32
    %c0_i32_0 = arith.constant 0 : i32
    return %arg0, %c0_i32 : i32, i32
  }
}

</mosaic_0001>

<bundles_post_ra>
// kernel: tpu_custom_call.1
= control target key start
LH: loop header
LB: loop body
LE: loop exit
PB: predicated region body
PF: predicated region fallthrough
CT: control target
= control target key end

     0   :  { %s578_s9 = smov 0   ;;  %s675_s0 = inlined_call_operand.vmem [shape: f32[128,16], index: 0, kind: input, shape index: {}]   ;;  %s676_s1 = inlined_call_operand.vmem [shape: s32[128,1], index: 1, kind: input, shape index: {}]   ;;  %s677_s2 = inlined_call_operand.vmem [shape: f32[128,1], index: 2, kind: output, shape index: {}]  }
   0x1 LB: > { %s481_s10 = sadd.s32 4294967295, %s560_s9   ;;  %p485_p0 = scmp.ge.s32.totalorder %s560_s9, 1  ;;  %s560_s9 = sphi %s578_s9, %s12_s9  }
   0x2   : > { %p124_p1 = scmp.lt.s32.totalorder %s560_s9, 3 }
   0x4   : > { %p125_p2 = pnand %p485_p0, %p124_p1 }
   0x5   : > { %s486_s11 = sshll.u32 (!%p125_p2), %s481_s10, 3 }
   0x6   : > { %128 = sbr.rel (%p125_p2) target bundleno = 361 (0x169), region = 28  ;;  %p152_p3 = scmp.lt.s32.totalorder (!%p125_p2), %s486_s11, 15 }
   0xb   : > { %v562_v0 = vmov 0   ;;  %s679_s11 = smov (!%p152_p3, %s486_s11), 15  ;;  %vm185_vm0 = vcmask 130048   ;;  %v258_v39 = vlaneseq  ;;  %vm404_vm9 = vcmask 7168  }
   0xc   : > { %503 = vset.pattern.permute.xlu0 %v562_v0  ;;  %505 = vset.pattern.permute.xlu2 %v562_v0  ;;  %s586_s12 = sshll.u32 %s679_s11, 3 }
   0xd   : > { %504 = vset.pattern.permute.xlu1 %v562_v0  ;;  %s155_s15 = scalar_lea.vmem %s675_s0, %s586_s12  ;;  %s161_s18 = scalar_lea.vmem %s676_s1, %s586_s12  ;;  %v620_v42 = vand.u32 127, %v258_v39 }
   0xe   : > { %v592_v1 = vld [vmem:[%s155_s15 + $0x20] sm:$0xff]  ;;  %v171_v2 = vld [vmem:[%s155_s15 + $0x10] sm:$0xff]  ;;  %v174_v7 = vld [vmem:[%s155_s15 + $0x28] sm:$0xff]  ;;  %s654_s21 = scalar_lea.vmem %s677_s2, %s586_s12 }
   0xf   : > { %v594_v3 = vld [vmem:[%s155_s15] sm:$0xff]  ;;  %v198_v4 = vsel %vm185_vm0, %v592_v1, -inf  ;;  %v192_v5 = vsel %vm185_vm0, %v171_v2, -inf  ;;  %v601_v8 = vld [vmem:[%s155_s15 + $0x18] sm:$0xff]  ;;  %v170_v9 = vld [vmem:[%s155_s15 + $0x8] sm:$0xff]  ;;  %v201_v10 = vsel %vm185_vm0, %v174_v7, -inf }
  0x10   : > { %v186_v6 = vsel %vm185_vm0, %v594_v3, -inf  ;;  %199 = vmax.xlane.f32.xlu2 %v198_v4  ;;  %193 = vmax.xlane.f32.xlu1 %v192_v5  ;;  %v195_v11 = vsel %vm185_vm0, %v601_v8, -inf  ;;  %v189_v12 = vsel %vm185_vm0, %v170_v9, -inf  ;;  %v607_v13 = vld [vmem:[%s155_s15 + $0x38] sm:$0xff]  ;;  %v175_v14 = vld [vmem:[%s155_s15 + $0x30] sm:$0xff]  ;;  %v177_v18 = vld [vmem:[%s161_s18] sm:$0xff] }
  0x11   : > { %187 = vmax.xlane.f32.xlu0 %v186_v6  ;;  %v207_v15 = vsel %vm185_vm0, %v607_v13, -inf  ;;  %v204_v16 = vsel %vm185_vm0, %v175_v14, -inf  ;;  %v179_v17 = vld [vmem:[%s161_s18 + $0x10] sm:$0xff]  ;;  %v180_v19 = vld [vmem:[%s161_s18 + $0x18] sm:$0xff]  ;;  %v178_v20 = vld [vmem:[%s161_s18 + $0x8] sm:$0xff] }
  0x12   : > { %v184_v21 = vld [vmem:[%s161_s18 + $0x38] sm:$0xff]  ;;  %v182_v22 = vld [vmem:[%s161_s18 + $0x28] sm:$0xff]  ;;  %v181_v23 = vld [vmem:[%s161_s18 + $0x20] sm:$0xff] }
  0x13   : > { %v183_v24 = vld [vmem:[%s161_s18 + $0x30] sm:$0xff] }
  0x18   : > { %202 = vmax.xlane.f32.xlu2 %v201_v10  ;;  %196 = vmax.xlane.f32.xlu1 %v195_v11 }
  0x19   : > { %190 = vmax.xlane.f32.xlu0 %v189_v12 }
  0x20   : > { %208 = vmax.xlane.f32.xlu1 %v207_v15 }
  0x21   : > { %205 = vmax.xlane.f32.xlu0 %v204_v16 }
  0x30   : > { %267 = vperm.xlu2 %505, %v179_v17  }
  0x35   : > { %261 = vperm.xlu0 %503, %v177_v18  }
  0x38   : > { %270 = vperm.xlu2 %505, %v180_v19  }
  0x39   : > { %264 = vperm.xlu1 %504, %v178_v20  }
  0x3d   : > { %282 = vperm.xlu0 %503, %v184_v21  }
  0x40   : > { %276 = vperm.xlu2 %505, %v182_v22  }
  0x41   : > { %273 = vperm.xlu1 %504, %v181_v23  }
  0x49   : > { %279 = vperm.xlu1 %504, %v183_v24  }
  0x83   : > { %v200_v25 = vpop.xlane.xlu2 %199  ;;  %v194_v30 = vpop.xlane.xlu1 %193 }
  0x84   : > { %v188_v26 = vpop.xlane.xlu0 %187  ;;  %v212_v44 = vsub.f32 %v171_v2, %v194_v30  ;;  %v214_v5 = vsub.f32 %v592_v1, %v200_v25 }
  0x85   : > { %v210_v46 = vsub.f32 %v594_v3, %v188_v26 }
  0x86   : > { %v222_v47 = vmul.f32 1.442695, %v212_v44 }
  0x87   : > { %v218_v52 = vmul.f32 1.442695, %v210_v46 }
  0x8b   : > { %v203_v27 = vpop.xlane.xlu2 %202  ;;  %v197_v37 = vpop.xlane.xlu1 %196 }
  0x8c   : > { %v191_v28 = vpop.xlane.xlu0 %190  ;;  %v215_v50 = vsub.f32 %v174_v7, %v203_v27  ;;  %v213_v59 = vsub.f32 %v601_v8, %v197_v37  ;;  %v226_v7 = vmul.f32 1.442695, %v214_v5 }
  0x8d   : > { %v211_v29 = vsub.f32 %v170_v9, %v191_v28 }
  0x8e   : > { %v228_v56 = vmul.f32 1.442695, %v215_v50  ;;  %v224_v0 = vmul.f32 1.442695, %v213_v59 }
  0x8f   : > { %v220_v31 = vmul.f32 1.442695, %v211_v29 }
  0x91   : > { %506 = vpow2.f32 %v220_v31 }
  0x93   : > { %v268_v32 = vpop.permute.xlu2 %267  ;;  %v209_v45 = vpop.xlane.xlu1 %208 }
  0x94   : > { %v206_v33 = vpop.xlane.xlu0 %205  ;;  %vm286_vm1 = vcmp.eq.s32.totalorder %v620_v42, %v268_v32  ;;  %v217_v11 = vsub.f32 %v607_v13, %v209_v45 }
  0x95   : > { %v616_v34 = vsub.f32 %v175_v14, %v206_v33  ;;  %v294_v48 = vsel %vm286_vm1, %v212_v44, 0.0 }
  0x96   : > { %v306_v53 = vsel %vm185_vm0, %v294_v48, 0.0  ;;  %v232_v15 = vmul.f32 1.442695, %v217_v11 }
  0x97   : > { %v230_v35 = vmul.f32 1.442695, %v616_v34  ;;  %v507_v36 = vpop.eup %506 }
  0x98   : > { %v237_v38 = vsel %vm185_vm0, %v507_v36, 0.0 }
  0x99   : > { %508 = vpow2.f32 %v230_v35  ;;  %238 = vadd.xlane.f32.xlu0 %v237_v38 }
  0x9a   : > { %510 = vpow2.f32 %v222_v47 }
  0x9b   : > { %v271_v40 = vpop.permute.xlu2 %270  ;;  %512 = vpow2.f32 %v218_v52 }
  0x9c   : > { %514 = vpow2.f32 %v228_v56  ;;  %vm287_vm5 = vcmp.eq.s32.totalorder %v620_v42, %v271_v40 }
  0x9d   : > { %516 = vpow2.f32 %v224_v0  ;;  %v295_v14 = vsel %vm287_vm5, %v213_v59, 0.0 }
  0x9e   : > { %518 = vpow2.f32 %v226_v7  ;;  %v309_v17 = vsel %vm185_vm0, %v295_v14, 0.0 }
  0x9f   : > { %v509_v41 = vpop.eup %508  ;;  %520 = vpow2.f32 %v232_v15 }
  0xa0   : > { %v252_v43 = vsel %vm185_vm0, %v509_v41, 0.0  ;;  %v511_v62 = vpop.eup %510 }
  0xa1   : > { %253 = vadd.xlane.f32.xlu0 %v252_v43  ;;  %v240_v2 = vsel %vm185_vm0, %v511_v62, 0.0  ;;  %v513_v3 = vpop.eup %512 }
  0xa2   : > { %v515_v4 = vpop.eup %514  ;;  %v234_v6 = vsel %vm185_vm0, %v513_v3, 0.0 }
  0xa3   : > { %v277_v49 = vpop.permute.xlu2 %276  ;;  %v249_v9 = vsel %vm185_vm0, %v515_v4, 0.0  ;;  %v517_v10 = vpop.eup %516 }
  0xa4   : > { %vm289_vm3 = vcmp.eq.s32.totalorder %v620_v42, %v277_v49  ;;  %v243_v12 = vsel %vm185_vm0, %v517_v10, 0.0  ;;  %v519_v1 = vpop.eup %518 }
  0xa5   : > { %v297_v58 = vsel %vm289_vm3, %v215_v50, 0.0  ;;  %v246_v18 = vsel %vm185_vm0, %v519_v1, 0.0  ;;  %v521_v20 = vpop.eup %520 }
  0xa6   : > { %v315_v63 = vsel %vm185_vm0, %v297_v58, 0.0  ;;  %v255_v21 = vsel %vm185_vm0, %v521_v20, 0.0 }
  0xa7   : > { %v262_v51 = vpop.permute.xlu0 %261 }
  0xa8   : > { %vm284_vm2 = vcmp.eq.s32.totalorder %v620_v42, %v262_v51 }
  0xa9   : > { %v292_v54 = vsel %vm284_vm2, %v210_v46, 0.0  ;;  %307 = vadd.xlane.f32.xlu0 %v306_v53 }
  0xaa   : > { %v300_v55 = vsel %vm185_vm0, %v292_v54, 0.0 }
  0xab   : > { %301 = vadd.xlane.f32.xlu1 %v300_v55  ;;  %v265_v57 = vpop.permute.xlu1 %264 }
  0xac   : > { %vm285_vm4 = vcmp.eq.s32.totalorder %v620_v42, %v265_v57 }
  0xad   : > { %v293_v60 = vsel %vm285_vm4, %v211_v29, 0.0 }
  0xae   : > { %v303_v61 = vsel %vm185_vm0, %v293_v60, 0.0 }
  0xaf   : > { %304 = vadd.xlane.f32.xlu2 %v303_v61  ;;  %v283_v23 = vpop.permute.xlu0 %282 }
  0xb0   : > { %vm291_vm8 = vcmp.eq.s32.totalorder %v620_v42, %v283_v23 }
  0xb1   : > { %316 = vadd.xlane.f32.xlu0 %v315_v63  ;;  %v299_v25 = vsel %vm291_vm8, %v217_v11, 0.0 }
  0xb2   : > { %v321_v26 = vsel %vm185_vm0, %v299_v25, 0.0 }
  0xb3   : > { %241 = vadd.xlane.f32.xlu1 %v240_v2  ;;  %v274_v8 = vpop.permute.xlu1 %273 }
  0xb4   : > { %vm288_vm7 = vcmp.eq.s32.totalorder %v620_v42, %v274_v8 }
  0xb5   : > { %v296_v22 = vsel %vm288_vm7, %v214_v5, 0.0 }
  0xb6   : > { %v312_v24 = vsel %vm185_vm0, %v296_v22, 0.0 }
  0xb7   : > { %235 = vadd.xlane.f32.xlu2 %v234_v6 }
  0xbb   : > { %250 = vadd.xlane.f32.xlu1 %v249_v9  ;;  %v280_v16 = vpop.permute.xlu1 %279 }
  0xbc   : > { %vm290_vm6 = vcmp.eq.s32.totalorder %v620_v42, %v280_v16 }
  0xbd   : > { %v298_v19 = vsel %vm290_vm6, %v616_v34, 0.0 }
  0xbe   : > { %v318_v13 = vsel %vm185_vm0, %v298_v19, 0.0 }
  0xbf   : > { %244 = vadd.xlane.f32.xlu2 %v243_v12 }
  0xc3   : > { %310 = vadd.xlane.f32.xlu1 %v309_v17 }
  0xc7   : > { %247 = vadd.xlane.f32.xlu2 %v246_v18 }
  0xcb   : > { %319 = vadd.xlane.f32.xlu1 %v318_v13 }
  0xcf   : > { %256 = vadd.xlane.f32.xlu2 %v255_v21 }
  0xd7   : > { %313 = vadd.xlane.f32.xlu2 %v312_v24 }
  0xdf   : > { %322 = vadd.xlane.f32.xlu2 %v321_v26 }
 0x10c   : > { %v239_v27 = vpop.xlane.xlu0 %238 }
 0x10d   : > { %522 = vlog2.f32 %v239_v27 }
 0x113   : > { %v523_v28 = vpop.eup %522 }
 0x114   : > { %v327_v30 = vmul.f32 0.6931472, %v523_v28  ;;  %v254_v32 = vpop.xlane.xlu0 %253 }
 0x11c   : > { %v308_v39 = vpop.xlane.xlu0 %307 }
 0x11e   : > { %v302_v29 = vpop.xlane.xlu1 %301 }
 0x122   : > { %v305_v31 = vpop.xlane.xlu2 %304 }
 0x123   : > { %v341_v33 = vsub.f32 %v327_v30, %v305_v31 }
 0x124   : > { %v317_v54 = vpop.xlane.xlu0 %316 }
 0x125   : > { %v349_v34 = vsub.f32 0.0, %v341_v33 }
 0x126   : > { %v242_v35 = vpop.xlane.xlu1 %241 }
 0x127   : > { %v358_v36 = vmul.f32 1.442695, %v349_v34  ;;  %524 = vlog2.f32 %v242_v35 }
 0x129   : > { %526 = vpow2.f32 %v358_v36 }
 0x12a   : > { %v236_v37 = vpop.xlane.xlu2 %235 }
 0x12b   : > { %528 = vlog2.f32 %v236_v37 }
 0x12d   : > { %v525_v38 = vpop.eup %524 }
 0x12e   : > { %v329_v40 = vmul.f32 0.6931472, %v525_v38  ;;  %v251_v41 = vpop.xlane.xlu1 %250 }
 0x12f   : > { %v527_v42 = vpop.eup %526  ;;  %530 = vlog2.f32 %v251_v41 }
 0x130   : > { %v373_v43 = vsub.f32 1.0, %v527_v42  ;;  %v342_v44 = vsub.f32 %v329_v40, %v308_v39 }
 0x131   : > { %v529_v45 = vpop.eup %528 }
 0x132   : > { %v381_v46 = vmax.f32 %v373_v43, 0.0  ;;  %v350_v47 = vsub.f32 0.0, %v342_v44  ;;  %v325_v48 = vmul.f32 0.6931472, %v529_v45  ;;  %v245_v49 = vpop.xlane.xlu2 %244 }
 0x133   : > { %532 = vlog2.f32 %v245_v49 }
 0x134   : > { %534 = vlog2.f32 %v254_v32  ;;  %v389_v50 = vmul.f32 %v381_v46, %v381_v46  ;;  %v360_v51 = vmul.f32 1.442695, %v350_v47  ;;  %v340_v52 = vsub.f32 %v325_v48, %v302_v29 }
 0x135   : > { %v531_v53 = vpop.eup %530 }
 0x136   : > { %v397_v55 = vmul.f32 %v389_v50, %v341_v33  ;;  %536 = vpow2.f32 %v360_v51  ;;  %v348_v56 = vsub.f32 0.0, %v340_v52  ;;  %v335_v57 = vmul.f32 0.6931472, %v531_v53  ;;  %v311_v58 = vpop.xlane.xlu1 %310 }
 0x138   : > { %406 = vst.msk [vmem:[%s654_s21 + $0x8] sm:$0xff] %vm404_vm9, %v397_v55  ;;  %v356_v59 = vmul.f32 1.442695, %v348_v56  ;;  %v345_v60 = vsub.f32 %v335_v57, %v317_v54 }
 0x139   : > { %v533_v61 = vpop.eup %532 }
 0x13a   : > { %v535_v62 = vpop.eup %534  ;;  %538 = vpow2.f32 %v356_v59  ;;  %v331_v63 = vmul.f32 0.6931472, %v533_v61  ;;  %v353_v0 = vsub.f32 0.0, %v345_v60  ;;  %v248_v2 = vpop.xlane.xlu2 %247 }
 0x13b   : > { %v337_v6 = vmul.f32 0.6931472, %v535_v62 }
 0x13c   : > { %v537_v3 = vpop.eup %536  ;;  %v343_v4 = vsub.f32 %v331_v63, %v311_v58  ;;  %v366_v5 = vmul.f32 1.442695, %v353_v0 }
 0x13d   : > { %v374_v7 = vsub.f32 1.0, %v537_v3 }
 0x13e   : > { %v351_v8 = vsub.f32 0.0, %v343_v4  ;;  %540 = vpow2.f32 %v366_v5  ;;  %v320_v9 = vpop.xlane.xlu1 %319 }
 0x13f   : > { %v382_v10 = vmax.f32 %v374_v7, 0.0  ;;  %v346_v11 = vsub.f32 %v337_v6, %v320_v9  ;;  %542 = vlog2.f32 %v248_v2 }
 0x140   : > { %v539_v12 = vpop.eup %538  ;;  %v362_v14 = vmul.f32 1.442695, %v351_v8 }
 0x141   : > { %v390_v1 = vmul.f32 %v382_v10, %v382_v10  ;;  %v372_v15 = vsub.f32 1.0, %v539_v12  ;;  %v354_v16 = vsub.f32 0.0, %v346_v11 }
 0x142   : > { %544 = vpow2.f32 %v362_v14  ;;  %v257_v17 = vpop.xlane.xlu2 %256 }
 0x143   : > { %v398_v18 = vmul.f32 %v390_v1, %v342_v44  ;;  %v380_v19 = vmax.f32 %v372_v15, 0.0  ;;  %v368_v13 = vmul.f32 1.442695, %v354_v16 }
 0x144   : > { %v541_v20 = vpop.eup %540 }
 0x145   : > { %407 = vst.msk [vmem:[%s654_s21 + $0x10] sm:$0xff] %vm404_vm9, %v398_v18  ;;  %v388_v21 = vmul.f32 %v380_v19, %v380_v19  ;;  %v377_v22 = vsub.f32 1.0, %v541_v20  ;;  %546 = vpow2.f32 %v368_v13  ;;  %v543_v23 = vpop.eup %542 }
 0x146   : > { %548 = vlog2.f32 %v257_v17  ;;  %v333_v29 = vmul.f32 0.6931472, %v543_v23 }
 0x147   : > { %v396_v24 = vmul.f32 %v388_v21, %v340_v52  ;;  %v385_v25 = vmax.f32 %v377_v22, 0.0 }
 0x148   : > { %v545_v26 = vpop.eup %544 }
 0x149   : > { %405 = vst.msk [vmem:[%s654_s21] sm:$0xff] %vm404_vm9, %v396_v24  ;;  %v375_v27 = vsub.f32 1.0, %v545_v26  ;;  %v393_v28 = vmul.f32 %v385_v25, %v385_v25 }
 0x14a   : > { %v314_v30 = vpop.xlane.xlu2 %313 }
 0x14b   : > { %v547_v31 = vpop.eup %546  ;;  %v383_v32 = vmax.f32 %v375_v27, 0.0  ;;  %v401_v33 = vmul.f32 %v393_v28, %v345_v60  ;;  %v344_v34 = vsub.f32 %v333_v29, %v314_v30 }
 0x14c   : > { %v378_v35 = vsub.f32 1.0, %v547_v31  ;;  %v549_v38 = vpop.eup %548 }
 0x14d   : > { %v391_v36 = vmul.f32 %v383_v32, %v383_v32  ;;  %410 = vst.msk [vmem:[%s654_s21 + $0x28] sm:$0xff] %vm404_vm9, %v401_v33  ;;  %v352_v37 = vsub.f32 0.0, %v344_v34  ;;  %v339_v43 = vmul.f32 0.6931472, %v549_v38 }
 0x14e   : > { %v386_v39 = vmax.f32 %v378_v35, 0.0 }
 0x14f   : > { %v399_v40 = vmul.f32 %v391_v36, %v343_v4  ;;  %v364_v41 = vmul.f32 1.442695, %v352_v37 }
 0x150   : > { %v394_v42 = vmul.f32 %v386_v39, %v386_v39 }
 0x151   : > { %408 = vst.msk [vmem:[%s654_s21 + $0x18] sm:$0xff] %vm404_vm9, %v399_v40  ;;  %550 = vpow2.f32 %v364_v41 }
 0x152   : > { %v402_v44 = vmul.f32 %v394_v42, %v346_v11  ;;  %v323_v45 = vpop.xlane.xlu2 %322 }
 0x153   : > { %v347_v46 = vsub.f32 %v339_v43, %v323_v45 }
 0x154   : > { %411 = vst.msk [vmem:[%s654_s21 + $0x30] sm:$0xff] %vm404_vm9, %v402_v44 }
 0x155   : > { %v355_v47 = vsub.f32 0.0, %v347_v46 }
 0x157   : > { %v551_v48 = vpop.eup %550  ;;  %v370_v49 = vmul.f32 1.442695, %v355_v47 }
 0x158   : > { %v376_v50 = vsub.f32 1.0, %v551_v48 }
 0x159   : > { %552 = vpow2.f32 %v370_v49 }
 0x15a   : > { %v384_v51 = vmax.f32 %v376_v50, 0.0 }
 0x15c   : > { %v392_v52 = vmul.f32 %v384_v51, %v384_v51 }
 0x15e   : > { %v400_v53 = vmul.f32 %v392_v52, %v344_v34 }
 0x15f   : > { %v553_v54 = vpop.eup %552 }
 0x160   : > { %409 = vst.msk [vmem:[%s654_s21 + $0x20] sm:$0xff] %vm404_vm9, %v400_v53  ;;  %v379_v55 = vsub.f32 1.0, %v553_v54 }
 0x162   : > { %v387_v56 = vmax.f32 %v379_v55, 0.0 }
 0x164   : > { %v395_v57 = vmul.f32 %v387_v56, %v387_v56 }
 0x166   : > { %v403_v58 = vmul.f32 %v395_v57, %v347_v46 }
 0x168   : > { %412 = vst.msk [vmem:[%s654_s21 + $0x38] sm:$0xff] %vm404_vm9, %v403_v58 }
 0x169 PF: > { %s12_s9 = sadd.s32 1, %s560_s9  }
 0x16a   : > { %p9_p4 = scmp.ge.s32.totalorder %s12_s9, 4  }
 0x16c   :  { %11 = sbr.rel (!%p9_p4) target bundleno = 1 (0x1), region = 61 }

</bundles_post_ra>
